<compile_context>
chip_gen: v7x
topology: tpu7x:2x2x1
jax: 0.10.0
libtpu: 0.0.40
codegen_flags: <defaults>
</compile_context>

<pallas_src>
import functools

import jax
import jax.numpy as jnp
from jax.experimental import pallas as pl
from jax.experimental.pallas import tpu as pltpu

_LANES = 128  # lane width for the trunk hidden dimensions


def trendnet_kernel(x_ref, w1_ref, w2_ref, w3_ref, wh_ref, b_ref, out_ref,
                    *, action_dim, head_lanes, compute_dtype):
    cd = compute_dtype
    x = x_ref[...].astype(cd)                                   # (TB, state_dim)

    # Shared trunk: 3x (Linear -> ReLU).  Biases live in one packed (8, 128)
    # tile: row 0 = b1, row 1 = b2, row 2 = b3, row 3 = fused head bias.
    h = jnp.dot(x, w1_ref[...], preferred_element_type=jnp.float32)
    h = jnp.maximum(h + b_ref[0:1, :], 0.0)
    h = jnp.dot(h.astype(cd), w2_ref[...], preferred_element_type=jnp.float32)
    h = jnp.maximum(h + b_ref[1:2, :], 0.0)
    h = jnp.dot(h.astype(cd), w3_ref[...], preferred_element_type=jnp.float32)
    h = jnp.maximum(h + b_ref[2:3, :], 0.0)

    # Fused heads: one MXU call; lane layout [mean(A) | std(A) | value(1) | 0].
    raw = jnp.dot(h.astype(cd), wh_ref[...],
                  preferred_element_type=jnp.float32)
    raw = raw + b_ref[3:4, 0:head_lanes]

    lane = jax.lax.broadcasted_iota(jnp.int32, raw.shape, 1)
    mean_v = jnp.tanh(raw)                                      # EUP
    # exp() is evaluated on the mean/value/padding lanes too; it may overflow
    # to +inf there, but those lanes are discarded by the select (no NaNs).
    std_v = jnp.clip(jnp.exp(raw), 1e-6, 50.0)
    out_ref[...] = jnp.where(
        lane < action_dim, mean_v,
        jnp.where(lane < 2 * action_dim, std_v, raw))


def _round_up(v, m):
    return (v + m - 1) // m * m


def _pad2d(w, rows, cols):
    return jnp.pad(w, ((0, rows - w.shape[0]), (0, cols - w.shape[1])))


def _choose_tiling(batch, block_b):
    """b_pad first, then a tile count; avoids padded-batch blowup and keeps
    >=2 grid steps whenever possible (so v7x's two TCs both get work)."""
    b_pad8 = _round_up(max(batch, 1), 8)
    n = -(-b_pad8 // block_b)              # ceil
    if b_pad8 >= 16:
        n = max(n, 2)
    tb = _round_up(-(-b_pad8 // n), 8)
    return n * tb, tb                      # (b_pad, tb); grid = n


def pack_params(params, compute_dtype, head_lanes):
    """Pad weights, fuse the three heads, pack all biases into one (8,128)."""
    P = _LANES
    state_dim = params["w1"].shape[0]
    # w1 kept at its natural (state_dim, 128) shape: no row padding needed.
    w1 = _pad2d(params["w1"], state_dim, P).astype(compute_dtype)
    w2 = _pad2d(params["w2"], P, P).astype(compute_dtype)
    w3 = _pad2d(params["w3"], P, P).astype(compute_dtype)
    wh = _pad2d(jnp.concatenate(
        [params["wm"], params["ws"], params["wv"]], axis=1),
        P, head_lanes).astype(compute_dtype)

    b = jnp.zeros((8, P), jnp.float32)
    b = b.at[0, : params["b1"].shape[-1]].set(params["b1"].reshape(-1))
    b = b.at[1, : params["b2"].shape[-1]].set(params["b2"].reshape(-1))
    b = b.at[2, : params["b3"].shape[-1]].set(params["b3"].reshape(-1))
    bh = jnp.concatenate([params["bm"].reshape(-1),
                          params["bs"].reshape(-1),
                          params["bv"].reshape(-1)])
    b = b.at[3, : bh.shape[0]].set(bh)
    return w1, w2, w3, wh, b


@functools.partial(jax.jit, static_argnames=("block_b", "compute_dtype"))
def trendnet_forward(x, params, *, block_b=1024, compute_dtype=jnp.bfloat16):
    """x: (B, H, W) float32.  Returns (mean, std, value).

    The torch Normal(mean, std) distribution is represented by its
    (mean, std) parameters.
    """
    B = x.shape[0]
    state_dim = x.shape[-2] * x.shape[-1]
    A = params["wm"].shape[1]
    assert 2 * A + 1 <= _LANES, "fused head must fit in one 128-lane tile"
    head_lanes = min(_LANES, _round_up(2 * A + 1, 32))

    x2d = x.reshape(B, state_dim).astype(jnp.float32)
    b_pad, tb = _choose_tiling(B, block_b)
    if b_pad != B:
        x2d = jnp.pad(x2d, ((0, b_pad - B), (0, 0)))   # sublane pad only

    w1, w2, w3, wh, b = pack_params(params, compute_dtype, head_lanes)

    kernel = functools.partial(trendnet_kernel, action_dim=A,
                               head_lanes=head_lanes,
                               compute_dtype=compute_dtype)
    wspec = pl.BlockSpec((_LANES, _LANES), lambda i: (0, 0))   # VMEM-resident
    out = pl.pallas_call(
        kernel,
        out_shape=jax.ShapeDtypeStruct((b_pad, head_lanes), jnp.float32),
        grid=(b_pad // tb,),
        in_specs=[
            pl.BlockSpec((tb, state_dim), lambda i: (i, 0)),        # x (pipelined)
            pl.BlockSpec((state_dim, _LANES), lambda i: (0, 0)),    # w1
            wspec, wspec,                                           # w2, w3
            pl.BlockSpec((_LANES, head_lanes), lambda i: (0, 0)),   # fused heads
            pl.BlockSpec((8, _LANES), lambda i: (0, 0)),            # packed biases
        ],
        out_specs=pl.BlockSpec((tb, head_lanes), lambda i: (i, 0)),
        compiler_params=pltpu.CompilerParams(
            dimension_semantics=("parallel",),   # shard batch over v7x's 2 TCs
            vmem_limit_bytes=32 << 20),
    )(x2d, w1, w2, w3, wh, b)

    mean = out[:B, :A]
    std = out[:B, A:2 * A]
    value = out[:B, 2 * A:2 * A + 1]
    return mean, std, value


def init_params(key, state_dim, action_dim):
    h1, h2, h = 128, 64, 16
    keys = jax.random.split(key, 12)

    def lin(kw, kb, fan_in, fan_out):
        # weight stored as (in, out), i.e. transposed vs. torch's (out, in)
        bound = 1.0 / jnp.sqrt(fan_in)
        w = jax.random.uniform(kw, (fan_in, fan_out), jnp.float32, -bound, bound)
        b = jax.random.uniform(kb, (1, fan_out), jnp.float32, -bound, bound)
        return w, b

    w1, b1 = lin(keys[0], keys[1], state_dim, h1)
    w2, b2 = lin(keys[2], keys[3], h1, h2)
    w3, b3 = lin(keys[4], keys[5], h2, h)
    wm, bm = lin(keys[6], keys[7], h, action_dim)
    ws, bs = lin(keys[8], keys[9], h, action_dim)
    wv, bv = lin(keys[10], keys[11], h, 1)
    return dict(w1=w1, b1=b1, w2=w2, b2=b2, w3=w3, b3=b3,
                wm=wm, bm=bm, ws=ws, bs=bs, wv=wv, bv=bv)


def trendnet_reference(x, params):
    """Pure-JAX reference for correctness checking."""
    B = x.shape[0]
    x2d = x.reshape(B, -1)
    h = jnp.maximum(x2d @ params["w1"] + params["b1"], 0.0)
    h = jnp.maximum(h @ params["w2"] + params["b2"], 0.0)
    h = jnp.maximum(h @ params["w3"] + params["b3"], 0.0)
    mean = jnp.tanh(h @ params["wm"] + params["bm"])
    std = jnp.clip(jnp.exp(h @ params["ws"] + params["bs"]), 1e-6, 50.0)
    value = h @ params["wv"] + params["bv"]
    return mean, std, value


if __name__ == "__main__":
    key = jax.random.PRNGKey(0)
    k_x, k_p = jax.random.split(key)

    # input_shape = (4, 16) -> state_dim = 64 ; action_shape = (8,) ; batch = 2
    B, H, W = 2, 4, 16
    action_dim = 8

    x = jax.random.normal(k_x, (B, H, W), dtype=jnp.float32)
    params = init_params(k_p, H * W, action_dim)

    r_mean, r_std, r_value = trendnet_reference(x, params)

    # f32 path: tight check against the pure-JAX reference.
    mean, std, value = jax.block_until_ready(
        trendnet_forward(x, params, compute_dtype=jnp.float32))
    assert mean.shape == (B, action_dim) and std.shape == (B, action_dim)
    assert value.shape == (B, 1)
    assert jnp.allclose(mean, r_mean, atol=2e-5)
    assert jnp.allclose(std, r_std, atol=2e-5, rtol=1e-5)
    assert jnp.allclose(value, r_value, atol=2e-5)

    # Default (bf16 MXU) perf path: looser tolerance vs the f32 reference.
    mean_b, std_b, value_b = jax.block_until_ready(trendnet_forward(x, params))
    assert mean_b.shape == (B, action_dim) and std_b.shape == (B, action_dim)
    assert value_b.shape == (B, 1)
    assert jnp.allclose(mean_b, r_mean, atol=5e-2, rtol=5e-2)
    assert jnp.allclose(std_b, r_std, atol=5e-2, rtol=5e-2)
    assert jnp.allclose(value_b, r_value, atol=5e-2, rtol=5e-2)

    print("KERNEL_OK")
</pallas_src>

<mosaic_0001>
module attributes {stable_mosaic.version = 11 : i64} {
  func.func @trendnet_kernel(%arg0: i32, %arg1: memref<8x64xf32, #tpu.memory_space<vmem>>, %arg2: memref<64x128xf32, #tpu.memory_space<vmem>>, %arg3: memref<128x128xf32, #tpu.memory_space<vmem>>, %arg4: memref<128x128xf32, #tpu.memory_space<vmem>>, %arg5: memref<128x32xf32, #tpu.memory_space<vmem>>, %arg6: memref<8x128xf32, #tpu.memory_space<vmem>>, %arg7: memref<8x32xf32, #tpu.memory_space<vmem>>) attributes {dimension_semantics = [#tpu.dimension_semantics<parallel>], iteration_bounds = array<i64: 1>, scalar_prefetch = 0 : i64, scratch_operands = 0 : i64, tpu.core_type = #tpu.core_type<tc>, window_params = [{transform_indices = @transform_0, window_bounds = array<i64: 8, 64>}, {pipeline_mode = #tpu.pipeline_mode<synchronous>, transform_indices = @transform_1, window_bounds = array<i64: 64, 128>}, {pipeline_mode = #tpu.pipeline_mode<synchronous>, transform_indices = @transform_2, window_bounds = array<i64: 128, 128>}, {pipeline_mode = #tpu.pipeline_mode<synchronous>, transform_indices = @transform_3, window_bounds = array<i64: 128, 128>}, {pipeline_mode = #tpu.pipeline_mode<synchronous>, transform_indices = @transform_4, window_bounds = array<i64: 128, 32>}, {pipeline_mode = #tpu.pipeline_mode<synchronous>, transform_indices = @transform_5, window_bounds = array<i64: 8, 128>}, {transform_indices = @transform_6, window_bounds = array<i64: 8, 32>}]} {
    %c0 = arith.constant 0 : index
    %c0_0 = arith.constant 0 : index
    %0 = vector.load %arg1[%c0, %c0_0] : memref<8x64xf32, #tpu.memory_space<vmem>>, vector<8x64xf32>
    %c0_1 = arith.constant 0 : index
    %c0_2 = arith.constant 0 : index
    %1 = vector.load %arg2[%c0_1, %c0_2] : memref<64x128xf32, #tpu.memory_space<vmem>>, vector<64x128xf32>
    %cst = arith.constant dense<0.000000e+00> : vector<8x128xf32>
    %2 = tpu.matmul %0, %1, %cst {dimension_numbers = #tpu.dot_dimension_numbers<[1], [0], [0], [1], [0, 0, 1, 1], [], []>} : vector<8x64xf32>, vector<64x128xf32>, vector<8x128xf32> -> vector<8x128xf32>
    %c0_3 = arith.constant 0 : index
    %c0_4 = arith.constant 0 : index
    %3 = vector.load %arg6[%c0_3, %c0_4] : memref<8x128xf32, #tpu.memory_space<vmem>>, vector<1x128xf32>
    %4 = vector.broadcast %3 : vector<1x128xf32> to vector<8x128xf32>
    %5 = arith.addf %2, %4 : vector<8x128xf32>
    %cst_5 = arith.constant 0.000000e+00 : f32
    %6 = vector.broadcast %cst_5 : f32 to vector<8x128xf32>
    %7 = arith.maximumf %5, %6 : vector<8x128xf32>
    %c0_6 = arith.constant 0 : index
    %c0_7 = arith.constant 0 : index
    %8 = vector.load %arg3[%c0_6, %c0_7] : memref<128x128xf32, #tpu.memory_space<vmem>>, vector<128x128xf32>
    %cst_8 = arith.constant dense<0.000000e+00> : vector<8x128xf32>
    %9 = tpu.matmul %7, %8, %cst_8 {dimension_numbers = #tpu.dot_dimension_numbers<[1], [0], [0], [1], [0, 0, 1, 1], [], []>} : vector<8x128xf32>, vector<128x128xf32>, vector<8x128xf32> -> vector<8x128xf32>
    %c1 = arith.constant 1 : index
    %c0_9 = arith.constant 0 : index
    %10 = vector.load %arg6[%c1, %c0_9] : memref<8x128xf32, #tpu.memory_space<vmem>>, vector<1x128xf32>
    %11 = vector.broadcast %10 : vector<1x128xf32> to vector<8x128xf32>
    %12 = arith.addf %9, %11 : vector<8x128xf32>
    %cst_10 = arith.constant 0.000000e+00 : f32
    %13 = vector.broadcast %cst_10 : f32 to vector<8x128xf32>
    %14 = arith.maximumf %12, %13 : vector<8x128xf32>
    %c0_11 = arith.constant 0 : index
    %c0_12 = arith.constant 0 : index
    %15 = vector.load %arg4[%c0_11, %c0_12] : memref<128x128xf32, #tpu.memory_space<vmem>>, vector<128x128xf32>
    %cst_13 = arith.constant dense<0.000000e+00> : vector<8x128xf32>
    %16 = tpu.matmul %14, %15, %cst_13 {dimension_numbers = #tpu.dot_dimension_numbers<[1], [0], [0], [1], [0, 0, 1, 1], [], []>} : vector<8x128xf32>, vector<128x128xf32>, vector<8x128xf32> -> vector<8x128xf32>
    %c2 = arith.constant 2 : index
    %c0_14 = arith.constant 0 : index
    %17 = vector.load %arg6[%c2, %c0_14] : memref<8x128xf32, #tpu.memory_space<vmem>>, vector<1x128xf32>
    %18 = vector.broadcast %17 : vector<1x128xf32> to vector<8x128xf32>
    %19 = arith.addf %16, %18 : vector<8x128xf32>
    %cst_15 = arith.constant 0.000000e+00 : f32
    %20 = vector.broadcast %cst_15 : f32 to vector<8x128xf32>
    %21 = arith.maximumf %19, %20 : vector<8x128xf32>
    %c0_16 = arith.constant 0 : index
    %c0_17 = arith.constant 0 : index
    %22 = vector.load %arg5[%c0_16, %c0_17] : memref<128x32xf32, #tpu.memory_space<vmem>>, vector<128x32xf32>
    %cst_18 = arith.constant dense<0.000000e+00> : vector<8x32xf32>
    %23 = tpu.matmul %21, %22, %cst_18 {dimension_numbers = #tpu.dot_dimension_numbers<[1], [0], [0], [1], [0, 0, 1, 1], [], []>} : vector<8x128xf32>, vector<128x32xf32>, vector<8x32xf32> -> vector<8x32xf32>
    %c3 = arith.constant 3 : index
    %c0_19 = arith.constant 0 : index
    %24 = vector.load %arg6[%c3, %c0_19] : memref<8x128xf32, #tpu.memory_space<vmem>>, vector<1x32xf32>
    %25 = vector.broadcast %24 : vector<1x32xf32> to vector<8x32xf32>
    %26 = arith.addf %23, %25 : vector<8x32xf32>
    %27 = tpu.iota {dimensions = array<i32: 1>} : vector<8x32xi32>
    %28 = math.tanh %26 : vector<8x32xf32>
    %29 = math.exp %26 : vector<8x32xf32>
    %cst_20 = arith.constant 9.99999997E-7 : f32
    %cst_21 = arith.constant 5.000000e+01 : f32
    %30 = vector.broadcast %cst_20 : f32 to vector<8x32xf32>
    %31 = arith.maximumf %30, %29 : vector<8x32xf32>
    %32 = vector.broadcast %cst_21 : f32 to vector<8x32xf32>
    %33 = arith.minimumf %32, %31 : vector<8x32xf32>
    %c8_i32 = arith.constant 8 : i32
    %34 = vector.broadcast %c8_i32 : i32 to vector<8x32xi32>
    %35 = arith.cmpi slt, %27, %34 : vector<8x32xi32>
    %c16_i32 = arith.constant 16 : i32
    %36 = vector.broadcast %c16_i32 : i32 to vector<8x32xi32>
    %37 = arith.cmpi slt, %27, %36 : vector<8x32xi32>
    %38 = arith.select %37, %33, %26 : vector<8x32xi1>, vector<8x32xf32>
    %39 = arith.select %35, %28, %38 : vector<8x32xi1>, vector<8x32xf32>
    %c0_22 = arith.constant 0 : index
    %c0_23 = arith.constant 0 : index
    %40 = vector.load %arg7[%c0_22, %c0_23] : memref<8x32xf32, #tpu.memory_space<vmem>>, vector<8x32xf32>
    tpu.vector_store %arg7[%c0_22, %c0_23], %39 {strides = array<i32>} : memref<8x32xf32, #tpu.memory_space<vmem>>, vector<8x32xf32>,
    return
  }
  func.func @transform_0(%arg0: i32) -> (i32, i32) {
    %c0_i32 = arith.constant 0 : i32
    %c0_i32_0 = arith.constant 0 : i32
    return %arg0, %c0_i32 : i32, i32
  }
  func.func @transform_1(%arg0: i32) -> (i32, i32) {
    %c0_i32 = arith.constant 0 : i32
    %c0_i32_0 = arith.constant 0 : i32
    %c0_i32_1 = arith.constant 0 : i32
    return %c0_i32, %c0_i32_0 : i32, i32
  }
  func.func @transform_2(%arg0: i32) -> (i32, i32) {
    %c0_i32 = arith.constant 0 : i32
    %c0_i32_0 = arith.constant 0 : i32
    %c0_i32_1 = arith.constant 0 : i32
    return %c0_i32, %c0_i32_0 : i32, i32
  }
  func.func @transform_3(%arg0: i32) -> (i32, i32) {
    %c0_i32 = arith.constant 0 : i32
    %c0_i32_0 = arith.constant 0 : i32
    %c0_i32_1 = arith.constant 0 : i32
    return %c0_i32, %c0_i32_0 : i32, i32
  }
  func.func @transform_4(%arg0: i32) -> (i32, i32) {
    %c0_i32 = arith.constant 0 : i32
    %c0_i32_0 = arith.constant 0 : i32
    %c0_i32_1 = arith.constant 0 : i32
    return %c0_i32, %c0_i32_0 : i32, i32
  }
  func.func @transform_5(%arg0: i32) -> (i32, i32) {
    %c0_i32 = arith.constant 0 : i32
    %c0_i32_0 = arith.constant 0 : i32
    %c0_i32_1 = arith.constant 0 : i32
    return %c0_i32, %c0_i32_0 : i32, i32
  }
  func.func @transform_6(%arg0: i32) -> (i32, i32) {
    %c0_i32 = arith.constant 0 : i32
    %c0_i32_0 = arith.constant 0 : i32
    return %arg0, %c0_i32 : i32, i32
  }
}

</mosaic_0001>

<bundles_post_ra>
// kernel: trendnet_forward.1
= control target key start
LH: loop header
LB: loop body
LE: loop exit
PB: predicated region body
PF: predicated region fallthrough
CT: control target
= control target key end

     0   :  { %v684_v0 = vmov 0.0|0.0   ;;  %vm685_vm0 = vmmov 0   ;;  %v686_v4 = vmov 0.0   ;;  %vm37_vm1 = vcmask 523264   ;;  %s944_s1 = inlined_call_operand.vmem [shape: f32[64,128], index: 1, kind: input, shape index: {}]   ;;  %s945_s2 = inlined_call_operand.vmem [shape: f32[128,128], index: 2, kind: input, shape index: {}]   ;;  %s946_s0 = inlined_call_operand.vmem [shape: f32[8,64], index: 0, kind: input, shape index: {}]   ;;  %s947_s3 = inlined_call_operand.vmem [shape: f32[128,128], index: 3, kind: input, shape index: {}]   ;;  %s948_s5 = inlined_call_operand.vmem [shape: f32[8,128], index: 5, kind: input, shape index: {}]   ;;  %s949_s4 = inlined_call_operand.vmem [shape: f32[128,32], index: 4, kind: input, shape index: {}]   ;;  %s950_s6 = inlined_call_operand.vmem [shape: f32[8,32], index: 6, kind: output, shape index: {}]  }
   0x1   :  { %593 = vmatprep.subr.bf16.mxu0 %v684_v0  ;;  %v24_v1 = vld [vmem:[%s944_s1] sm:$0xff]  ;;  %v25_v2 = vld [vmem:[%s944_s1 + $0x8] sm:$0xff]  ;;  %v26_v3 = vld [vmem:[%s944_s1 + $0x10] sm:$0xff]  ;;  %485 = vmatprep.mubr.msk.f32.mxu0 %vm685_vm0, %v686_v4  ;;  %vm398_vm4 = vcmask 261120  }
   0x2   :  { %v594_v5 = vpack.c.bf16 %v25_v2, %v24_v1  ;;  %v27_v6 = vld [vmem:[%s944_s1 + $0x18] sm:$0xff]  ;;  %605 = vmatprep.subr.bf16.mxu1 %v684_v0  ;;  %520 = vmatprep.mubr.msk.f32.mxu1 %vm685_vm0, %v686_v4  ;;  %v112_v8 = vld [vmem:[%s945_s2] sm:$0xff]  ;;  %v113_v9 = vld [vmem:[%s945_s2 + $0x8] sm:$0xff] }
   0x3   :  { %v597_v7 = vpack.c.bf16 %v27_v6, %v26_v3  ;;  %v114_v10 = vld [vmem:[%s945_s2 + $0x10] sm:$0xff]  ;;  %v28_v11 = vld [vmem:[%s944_s1 + $0x20] sm:$0xff]  ;;  %v29_v12 = vld [vmem:[%s944_s1 + $0x28] sm:$0xff]  ;;  %v606_v13 = vpack.c.bf16 %v113_v9, %v112_v8 }
   0x4   :  { %595 = vmatpush3.bf16.msra.mxu0 %v594_v5  ;;  %v115_v14 = vld [vmem:[%s945_s2 + $0x18] sm:$0xff]  ;;  %v600_v16 = vpack.c.bf16 %v29_v12, %v28_v11  ;;  %v116_v17 = vld [vmem:[%s945_s2 + $0x20] sm:$0xff]  ;;  %v117_v18 = vld [vmem:[%s945_s2 + $0x28] sm:$0xff] }
   0x5   :  { %596 = vmatprep.subr.bf16.mxu0 %v684_v0  ;;  %607 = vmatpush3.bf16.msra.mxu1 %v606_v13  ;;  %v609_v15 = vpack.c.bf16 %v115_v14, %v114_v10  ;;  %v30_v19 = vld [vmem:[%s944_s1 + $0x30] sm:$0xff]  ;;  %v31_v20 = vld [vmem:[%s944_s1 + $0x38] sm:$0xff]  ;;  %v612_v21 = vpack.c.bf16 %v117_v18, %v116_v17  ;;  %v23_v26 = vld [vmem:[%s946_s0] sm:$0xff] }
   0x6   :  { %608 = vmatprep.subr.bf16.mxu1 %v684_v0  ;;  %v603_v22 = vpack.c.bf16 %v31_v20, %v30_v19  ;;  %v118_v23 = vld [vmem:[%s945_s2 + $0x30] sm:$0xff]  ;;  %v119_v24 = vld [vmem:[%s945_s2 + $0x38] sm:$0xff]  ;;  %v120_v27 = vld [vmem:[%s945_s2 + $0x40] sm:$0xff] }
   0x7   :  { %v615_v25 = vpack.c.bf16 %v119_v24, %v118_v23  ;;  %v121_v28 = vld [vmem:[%s945_s2 + $0x48] sm:$0xff]  ;;  %v122_v30 = vld [vmem:[%s945_s2 + $0x50] sm:$0xff]  ;;  %v123_v31 = vld [vmem:[%s945_s2 + $0x58] sm:$0xff] }
   0x8   :  { %598 = vmatpush3.bf16.msra.mxu0 %v597_v7  ;;  %v618_v29 = vpack.c.bf16 %v121_v28, %v120_v27  ;;  %v621_v32 = vpack.c.bf16 %v123_v31, %v122_v30  ;;  %v124_v33 = vld [vmem:[%s945_s2 + $0x60] sm:$0xff]  ;;  %v125_v34 = vld [vmem:[%s945_s2 + $0x68] sm:$0xff]  ;;  %v126_v36 = vld [vmem:[%s945_s2 + $0x70] sm:$0xff] }
   0x9   :  { %599 = vmatprep.subr.bf16.mxu0 %v684_v0  ;;  %610 = vmatpush3.bf16.msra.mxu1 %v609_v15  ;;  %v624_v35 = vpack.c.bf16 %v125_v34, %v124_v33  ;;  %v127_v37 = vld [vmem:[%s945_s2 + $0x78] sm:$0xff]  ;;  %v204_v39 = vld [vmem:[%s947_s3] sm:$0xff]  ;;  %v205_v40 = vld [vmem:[%s947_s3 + $0x8] sm:$0xff] }
   0xa   :  { %611 = vmatprep.subr.bf16.mxu1 %v684_v0  ;;  %v627_v38 = vpack.c.bf16 %v127_v37, %v126_v36  ;;  %v206_v41 = vld [vmem:[%s947_s3 + $0x10] sm:$0xff]  ;;  %v630_v42 = vpack.c.bf16 %v205_v40, %v204_v39  ;;  %v207_v43 = vld [vmem:[%s947_s3 + $0x18] sm:$0xff]  ;;  %v208_v45 = vld [vmem:[%s947_s3 + $0x20] sm:$0xff] }
   0xb   :  { %v633_v44 = vpack.c.bf16 %v207_v43, %v206_v41  ;;  %v209_v46 = vld [vmem:[%s947_s3 + $0x28] sm:$0xff]  ;;  %v210_v48 = vld [vmem:[%s947_s3 + $0x30] sm:$0xff]  ;;  %v211_v49 = vld [vmem:[%s947_s3 + $0x38] sm:$0xff]  ;;  %v387_v43 = vlaneseq }
   0xc   :  { %601 = vmatpush3.bf16.msra.mxu0 %v600_v16  ;;  %v636_v47 = vpack.c.bf16 %v209_v46, %v208_v45  ;;  %v639_v50 = vpack.c.bf16 %v211_v49, %v210_v48  ;;  %v212_v51 = vld [vmem:[%s947_s3 + $0x40] sm:$0xff]  ;;  %v213_v52 = vld [vmem:[%s947_s3 + $0x48] sm:$0xff]  ;;  %v214_v54 = vld [vmem:[%s947_s3 + $0x50] sm:$0xff] }
   0xd   :  { %602 = vmatprep.subr.bf16.mxu0 %v684_v0  ;;  %613 = vmatpush3.bf16.msra.mxu1 %v612_v21  ;;  %v642_v53 = vpack.c.bf16 %v213_v52, %v212_v51  ;;  %v215_v55 = vld [vmem:[%s947_s3 + $0x58] sm:$0xff]  ;;  %v216_v57 = vld [vmem:[%s947_s3 + $0x60] sm:$0xff]  ;;  %v217_v58 = vld [vmem:[%s947_s3 + $0x68] sm:$0xff] }
   0xe   :  { %614 = vmatprep.subr.bf16.mxu1 %v684_v0  ;;  %v645_v56 = vpack.c.bf16 %v215_v55, %v214_v54  ;;  %v648_v59 = vpack.c.bf16 %v217_v58, %v216_v57  ;;  %v404_v60 = vld [vmem:[%s948_s5] ss:$0 sm:$0xff]  ;;  %v218_v2 = vld [vmem:[%s947_s3 + $0x70] sm:$0xff]  ;;  %v219_v3 = vld [vmem:[%s947_s3 + $0x78] sm:$0xff] }
   0xf   :  { %v651_v5 = vpack.c.bf16 %v219_v3, %v218_v2  ;;  %v296_v6 = vld [vmem:[%s949_s4] sm:$0xff]  ;;  %v297_v7 = vld [vmem:[%s949_s4 + $0x8] sm:$0xff]  ;;  %v299_v9 = vld [vmem:[%s949_s4 + $0x18] sm:$0xff] }
  0x10   :  { %604 = vmatpush3.bf16.msra.mxu0 %v603_v22  ;;  %v654_v8 = vpack.c.bf16 %v297_v7, %v296_v6  ;;  %v300_v11 = vld [vmem:[%s949_s4 + $0x20] sm:$0xff]  ;;  %v301_v12 = vld [vmem:[%s949_s4 + $0x28] sm:$0xff]  ;;  %v302_v14 = vld [vmem:[%s949_s4 + $0x30] sm:$0xff] }
  0x11   :  { %629 = vmatprep.subr.bf16.mxu0 %v684_v0  ;;  %616 = vmatpush3.bf16.msra.mxu1 %v615_v25  ;;  %v660_v13 = vpack.c.bf16 %v301_v12, %v300_v11  ;;  %v303_v15 = vld [vmem:[%s949_s4 + $0x38] sm:$0xff]  ;;  %v304_v17 = vld [vmem:[%s949_s4 + $0x40] sm:$0xff]  ;;  %v305_v18 = vld [vmem:[%s949_s4 + $0x48] sm:$0xff] }
  0x12   :  { %617 = vmatprep.subr.bf16.mxu1 %v684_v0  ;;  %v663_v16 = vpack.c.bf16 %v303_v15, %v302_v14  ;;  %v666_v19 = vpack.c.bf16 %v305_v18, %v304_v17  ;;  %v306_v20 = vld [vmem:[%s949_s4 + $0x50] sm:$0xff]  ;;  %v307_v21 = vld [vmem:[%s949_s4 + $0x58] sm:$0xff]  ;;  %v308_v23 = vld [vmem:[%s949_s4 + $0x60] sm:$0xff] }
  0x13   :  { %486 = vmatmul.mubr.msk.f32.vlgmr.msra.gmra.mrb[0].mxu0 %vm37_vm1, %v23_v26  ;;  %v669_v22 = vpack.c.bf16 %v307_v21, %v306_v20  ;;  %v309_v24 = vld [vmem:[%s949_s4 + $0x68] sm:$0xff]  ;;  %v406_v26 = vld [vmem:[%s948_s5 + $0x1] ss:$0 sm:$0xff]  ;;  %v310_v31 = vld [vmem:[%s949_s4 + $0x70] sm:$0xff] }
  0x14   :  { %555 = vmatprep.mubr.msk.f32.mxu0 %vm685_vm0, %v686_v4  ;;  %631 = vmatpush3.bf16.msra.mxu0 %v630_v42  ;;  %v672_v25 = vpack.c.bf16 %v309_v24, %v308_v23 }
  0x15   :  { %619 = vmatpush3.bf16.msra.mxu1 %v618_v29  ;;  %632 = vmatprep.subr.bf16.mxu0 %v684_v0 }
  0x16   :  { %620 = vmatprep.subr.bf16.mxu1 %v684_v0 }
  0x18   :  { %634 = vmatpush3.bf16.msra.mxu0 %v633_v44  ;;  %v388_v44 = vand.u32 127, %v387_v43 }
  0x19   :  { %622 = vmatpush3.bf16.msra.mxu1 %v621_v32  ;;  %635 = vmatprep.subr.bf16.mxu0 %v684_v0  ;;  %v311_v32 = vld [vmem:[%s949_s4 + $0x78] sm:$0xff] }
  0x1a   :  { %623 = vmatprep.subr.bf16.mxu1 %v684_v0  ;;  %v675_v33 = vpack.c.bf16 %v311_v32, %v310_v31  ;;  %vm395_vm2 = vcmp.lt.s32.totalorder %v388_v44, 16  ;;  %vm394_vm3 = vcmp.lt.s32.totalorder %v388_v44, 8 }
  0x1c   :  { %637 = vmatpush3.bf16.msra.mxu0 %v636_v47 }
  0x1d   :  { %625 = vmatpush3.bf16.msra.mxu1 %v624_v35  ;;  %638 = vmatprep.subr.bf16.mxu0 %v684_v0 }
  0x1e   :  { %626 = vmatprep.subr.bf16.mxu1 %v684_v0 }
  0x20   :  { %640 = vmatpush3.bf16.msra.mxu0 %v639_v50 }
  0x21   :  { %628 = vmatpush3.bf16.msra.mxu1 %v627_v38  ;;  %641 = vmatprep.subr.bf16.mxu0 %v684_v0  ;;  %v408_v38 = vld [vmem:[%s948_s5 + $0x3] ss:$0 sm:$0xff] }
  0x22   :  { %653 = vmatprep.subr.bf16.mxu1 %v684_v0 }
  0x24   :  { %643 = vmatpush3.bf16.msra.mxu0 %v642_v53 }
  0x25   :  { %644 = vmatprep.subr.bf16.mxu0 %v684_v0 }
  0x28   :  { %646 = vmatpush3.bf16.msra.mxu0 %v645_v56 }
  0x29   :  { %647 = vmatprep.subr.bf16.mxu0 %v684_v0 }
  0x2c   :  { %649 = vmatpush3.bf16.msra.mxu0 %v648_v59 }
  0x2d   :  { %650 = vmatprep.subr.bf16.mxu0 %v684_v0 }
  0x30   :  { %652 = vmatpush3.bf16.msra.mxu0 %v651_v5 }
  0xe6   :  { %v107_v61 = vpop.f32.mrb[0].mxu0 }
  0xe7   :  { %v108_v62 = vadd.f32 %v404_v60, %v107_v61  ;;  %v487_v63 = vpop.f32.mrb[1].mxu0 }
  0xe9   :  { %v111_v1 = vmax.f32 %v108_v62, 0.0 }
  0xeb   :  { %521 = vmatmul.mubr.f32.vlgmr.msra.gmra.mrb[0].mxu1 %v111_v1 }
  0xec   :  { %590 = vmatprep.mubr.msk.f32.mxu1 %vm685_vm0, %v686_v4  ;;  %v298_v4 = vld [vmem:[%s949_s4 + $0x10] sm:$0xff]  ;;  %655 = vmatpush3.bf16.msra.mxu1 %v654_v8 }
  0xed   :  { %v657_v10 = vpack.c.bf16 %v299_v9, %v298_v4  ;;  %656 = vmatprep.subr.bf16.mxu1 %v684_v0 }
  0xf0   :  { %658 = vmatpush3.bf16.msra.mxu1 %v657_v10 }
  0xf1   :  { %659 = vmatprep.subr.bf16.mxu1 %v684_v0 }
  0xf4   :  { %661 = vmatpush3.bf16.msra.mxu1 %v660_v13 }
  0xf5   :  { %662 = vmatprep.subr.bf16.mxu1 %v684_v0 }
  0xf8   :  { %664 = vmatpush3.bf16.msra.mxu1 %v663_v16 }
  0xf9   :  { %665 = vmatprep.subr.bf16.mxu1 %v684_v0 }
  0xfc   :  { %667 = vmatpush3.bf16.msra.mxu1 %v666_v19 }
  0xfd   :  { %668 = vmatprep.subr.bf16.mxu1 %v684_v0 }
 0x100   :  { %670 = vmatpush3.bf16.msra.mxu1 %v669_v22 }
 0x101   :  { %671 = vmatprep.subr.bf16.mxu1 %v684_v0 }
 0x104   :  { %673 = vmatpush3.bf16.msra.mxu1 %v672_v25 }
 0x105   :  { %674 = vmatprep.subr.bf16.mxu1 %v684_v0  ;;  %v407_v0 = vld [vmem:[%s948_s5 + $0x2] ss:$0 sm:$0xff] }
 0x108   :  { %676 = vmatpush3.bf16.msra.mxu1 %v675_v33 }
 0x1be   :  { %v199_v27 = vpop.f32.mrb[0].mxu1 }
 0x1bf   :  { %v200_v28 = vadd.f32 %v406_v26, %v199_v27  ;;  %v522_v29 = vpop.f32.mrb[1].mxu1 }
 0x1c1   :  { %v203_v30 = vmax.f32 %v200_v28, 0.0 }
 0x1c3   :  { %556 = vmatmul.mubr.f32.vlgmr.msra.gmra.mrb[2].mxu0 %v203_v30 }
 0x296   :  { %v291_v34 = vpop.f32.mrb[2].mxu0 }
 0x297   :  { %v292_v35 = vadd.f32 %v407_v0, %v291_v34  ;;  %v557_v36 = vpop.f32.mrb[3].mxu0 }
 0x299   :  { %v295_v37 = vmax.f32 %v292_v35, 0.0 }
 0x29b   :  { %591 = vmatmul.mubr.f32.vlgmr.msra.gmra.mrb[2].mxu1 %v295_v37 }
 0x36e   :  { %v383_v39 = vpop.f32.mrb[2].mxu1 }
 0x36f   :  { %v384_v40 = vadd.f32 %v408_v38, %v383_v39  ;;  %v592_v41 = vpop.f32.mrb[3].mxu1 }
 0x371   :  { %v390_v42 = vmul.f32 1.442695, %v384_v40 }
 0x373   :  { %680 = vpow2.f32 %v390_v42 }
 0x374   :  { %682 = vtanh.f32 %v384_v40 }
 0x37d   :  { %v681_v45 = vpop.eup %680 }
 0x37e   :  { %v392_v46 = vmax.f32 %v681_v45, 1e-06  ;;  %v683_v48 = vpop.eup %682 }
 0x380   :  { %v393_v47 = vmin.f32 %v392_v46, 50.0 }
 0x382   :  { %v396_v49 = vsel %vm395_vm2, %v393_v47, %v384_v40 }
 0x383   :  { %v397_v50 = vsel %vm394_vm3, %v683_v48, %v396_v49 }
 0x384   :  { %399 = vst.msk [vmem:[%s950_s6] sm:$0xff] %vm398_vm4, %v397_v50 }

</bundles_post_ra>
